<compile_context>
chip_gen: v5e
topology: v5e:2x2
jax: 0.10.0
libtpu: 0.0.40
codegen_flags: <defaults>
</compile_context>

<pallas_src>
import jax
import jax.numpy as jnp
from jax.experimental import pallas as pl
from jax.experimental.pallas import tpu as pltpu


def _surrogate_linear_kernel(x_ref, w_ref, b_ref, o_ref):
    # x_ref: [TB, A] (VMEM), w_ref: [1, A] (VMEM, resident across tiles),
    # b_ref: [1, 1] (SMEM scalar), o_ref: [1, 1, TB] (VMEM, lane-dense row).
    row = jax.lax.dot_general(
        w_ref[...], x_ref[...],
        dimension_numbers=(((1,), (1,)), ((), ())),   # contract the alpha axis
        preferred_element_type=jnp.float32,
        precision=jax.lax.Precision.HIGHEST,          # keep f32 accuracy on the MXU
    )                                                  # -> [1, TB], lane-dense
    row = row + b_ref[0, 0].astype(jnp.float32)
    o_ref[...] = row.reshape(o_ref.shape).astype(o_ref.dtype)


# --- batch-tile selection (per-step DMA budget + VMEM cap) -------------------
_TARGET_TILE_BYTES = 4 * 1024 * 1024     # ~85% of HBM roofline per measured data
_ALPHAS_VMEM_BUDGET = 16 * 1024 * 1024   # double-buffered alphas tiles, fits all gens
_MAX_BATCH_TILE = 32 * 1024              # keeps (1,1,TB) output block / row vregs sane
_MIN_BATCH_TILE = 512                    # step-overhead floor


def _round_up_8(n):
    return max(8, ((n + 7) // 8) * 8)


def _round_dn_8(n):
    return max(8, (n // 8) * 8)


def _pick_batch_tile(batch, alpha_size, itemsize):
    row_bytes = max(1, itemsize * alpha_size)
    tb = max(_TARGET_TILE_BYTES // row_bytes, _MIN_BATCH_TILE)
    tb = min(tb, _ALPHAS_VMEM_BUDGET // (2 * row_bytes), _MAX_BATCH_TILE)
    tb = _round_dn_8(tb)
    if batch <= tb:
        # Split into two tiles when there is enough work so the "parallel" grid
        # axis feeds both v7x TensorCores; single full tile for tiny batches.
        tb = _round_up_8(-(-batch // 2)) if batch >= 16 else batch
    return tb


@jax.jit
def surrogate_linear(alphas, weight, bias):
    """SurrogateLinear forward: alphas[B,A] @ weight[1,A]^T + bias[1] -> [B,1]."""
    batch, alpha_size = alphas.shape
    tb = _pick_batch_tile(batch, alpha_size, alphas.dtype.itemsize)
    grid_b = pl.cdiv(batch, tb)

    cost = pl.CostEstimate(
        flops=2 * batch * alpha_size,
        transcendentals=0,
        bytes_accessed=(batch * alpha_size + batch + alpha_size + 1)
        * alphas.dtype.itemsize,
    )

    out3 = pl.pallas_call(
        _surrogate_linear_kernel,
        out_shape=jax.ShapeDtypeStruct((grid_b, 1, tb), alphas.dtype),
        grid_spec=pltpu.PrefetchScalarGridSpec(
            num_scalar_prefetch=0,
            grid=(grid_b,),
            in_specs=[
                # alphas: tiled along batch, full alpha_size (last dim full).
                pl.BlockSpec((tb, alpha_size), lambda i: (i, 0)),
                # weight row: resident in VMEM across all batch tiles.
                pl.BlockSpec((1, alpha_size), lambda i: (0, 0)),
                # bias: scalar in SMEM.
                pl.BlockSpec(memory_space=pltpu.MemorySpace.SMEM),
            ],
            out_specs=pl.BlockSpec((1, 1, tb), lambda i: (i, 0, 0)),
        ),
        compiler_params=pltpu.CompilerParams(
            dimension_semantics=("parallel",),
            vmem_limit_bytes=32 * 1024 * 1024,
        ),
        cost_estimate=cost,
    )(alphas, weight, bias.reshape(1, 1))

    # Lane-dense kernel layout -> public (batch, 1); rows past `batch` in the last
    # (partial) tile are padding and are sliced away here.
    return out3.reshape(grid_b * tb)[:batch].reshape(batch, 1)


# TODO(synk): SurrogateLinear.learn() (closed-form ridge fit + logging) is host-side
# training code, not part of the forward pass, and is intentionally not kernelized.


if __name__ == "__main__":
    key = jax.random.PRNGKey(0)
    k_x, k_w, k_b, k_x2, k_w2, k_b2 = jax.random.split(key, 6)

    # --- Small case: single tile, alpha_size not a multiple of 128. ---
    batch, alpha_size = 8, 32
    bound = 1.0 / jnp.sqrt(jnp.float32(alpha_size))
    weight = jax.random.uniform(k_w, (1, alpha_size), jnp.float32,
                                minval=-bound, maxval=bound)
    bias = jax.random.uniform(k_b, (1,), jnp.float32, minval=-bound, maxval=bound)
    alphas = jax.random.normal(k_x, (batch, alpha_size), jnp.float32)

    out = jax.block_until_ready(surrogate_linear(alphas, weight, bias))
    ref = jnp.sum(alphas * weight, axis=-1, keepdims=True) + bias  # exact f32 ref
    assert out.shape == (batch, 1)
    assert jnp.allclose(out, ref, atol=1e-5, rtol=1e-4), \
        float(jnp.max(jnp.abs(out - ref)))

    # --- Larger case: 2-tile split (v7x dual-TC path), partial last tile,
    #     resident weight reused across grid steps. ---
    big_batch, alpha_size2 = 1032, 384
    bound2 = 1.0 / jnp.sqrt(jnp.float32(alpha_size2))
    weight2 = jax.random.uniform(k_w2, (1, alpha_size2), jnp.float32,
                                 minval=-bound2, maxval=bound2)
    bias2 = jax.random.uniform(k_b2, (1,), jnp.float32, minval=-bound2, maxval=bound2)
    alphas2 = jax.random.normal(k_x2, (big_batch, alpha_size2), jnp.float32)

    out2 = jax.block_until_ready(surrogate_linear(alphas2, weight2, bias2))
    ref2 = jnp.sum(alphas2 * weight2, axis=-1, keepdims=True) + bias2
    assert out2.shape == (big_batch, 1)
    assert jnp.allclose(out2, ref2, atol=1e-5, rtol=1e-4), \
        float(jnp.max(jnp.abs(out2 - ref2)))

    print("KERNEL_OK")
</pallas_src>

<mosaic_0001>
module attributes {stable_mosaic.version = 11 : i64} {
  func.func @_surrogate_linear_kernel(%arg0: i32, %arg1: memref<8x32xf32, #tpu.memory_space<vmem>>, %arg2: memref<1x32xf32, #tpu.memory_space<vmem>>, %arg3: memref<1x1xf32, #tpu.memory_space<smem>>, %arg4: memref<1x1x8xf32, #tpu.memory_space<vmem>>) attributes {dimension_semantics = [#tpu.dimension_semantics<parallel>], iteration_bounds = array<i64: 1>, scalar_prefetch = 0 : i64, scratch_operands = 0 : i64, tpu.core_type = #tpu.core_type<tc>, window_params = [{transform_indices = @transform_0, window_bounds = array<i64: 8, 32>}, {pipeline_mode = #tpu.pipeline_mode<synchronous>, transform_indices = @transform_1, window_bounds = array<i64: 1, 32>}, {transform_indices = @transform_2, window_bounds = array<i64: 1, 1>}, {transform_indices = @transform_3, window_bounds = array<i64: 1, 1, 8>}]} {
    %c0 = arith.constant 0 : index
    %c0_0 = arith.constant 0 : index
    %0 = vector.load %arg2[%c0, %c0_0] : memref<1x32xf32, #tpu.memory_space<vmem>>, vector<1x32xf32>
    %c0_1 = arith.constant 0 : index
    %c0_2 = arith.constant 0 : index
    %1 = vector.load %arg1[%c0_1, %c0_2] : memref<8x32xf32, #tpu.memory_space<vmem>>, vector<8x32xf32>
    %cst = arith.constant dense<0.000000e+00> : vector<1x8xf32>
    %2 = tpu.matmul %0, %1, %cst {dimension_numbers = #tpu.dot_dimension_numbers<[1], [1], [0], [0], [0, 0, 1, 0], [], []>, precision = #tpu.contract_precision<fp32>} : vector<1x32xf32>, vector<8x32xf32>, vector<1x8xf32> -> vector<1x8xf32>
    %c0_3 = arith.constant 0 : index
    %c0_4 = arith.constant 0 : index
    %3 = memref.load %arg3[%c0_3, %c0_4] : memref<1x1xf32, #tpu.memory_space<smem>>
    %4 = vector.broadcast %3 : f32 to vector<1x8xf32>
    %5 = arith.addf %2, %4 : vector<1x8xf32>
    %6 = vector.shape_cast %5 : vector<1x8xf32> to vector<1x1x8xf32>
    %c0_5 = arith.constant 0 : index
    %c0_6 = arith.constant 0 : index
    %c0_7 = arith.constant 0 : index
    %7 = vector.load %arg4[%c0_5, %c0_6, %c0_7] : memref<1x1x8xf32, #tpu.memory_space<vmem>>, vector<1x1x8xf32>
    tpu.vector_store %arg4[%c0_5, %c0_6, %c0_7], %6 {strides = array<i32>} : memref<1x1x8xf32, #tpu.memory_space<vmem>>, vector<1x1x8xf32>,
    return
  }
  func.func @transform_0(%arg0: i32) -> (i32, i32) {
    %c0_i32 = arith.constant 0 : i32
    %c0_i32_0 = arith.constant 0 : i32
    return %arg0, %c0_i32 : i32, i32
  }
  func.func @transform_1(%arg0: i32) -> (i32, i32) {
    %c0_i32 = arith.constant 0 : i32
    %c0_i32_0 = arith.constant 0 : i32
    %c0_i32_1 = arith.constant 0 : i32
    return %c0_i32, %c0_i32_0 : i32, i32
  }
  func.func @transform_2(%arg0: i32) -> (i32, i32) {
    %c0_i32 = arith.constant 0 : i32
    %c0_i32_0 = arith.constant 0 : i32
    %c0_i32_1 = arith.constant 0 : i32
    return %c0_i32, %c0_i32_0 : i32, i32
  }
  func.func @transform_3(%arg0: i32) -> (i32, i32, i32) {
    %c0_i32 = arith.constant 0 : i32
    %c0_i32_0 = arith.constant 0 : i32
    %c0_i32_1 = arith.constant 0 : i32
    return %arg0, %c0_i32, %c0_i32_0 : i32, i32, i32
  }
}

</mosaic_0001>

<bundles_post_ra>
// kernel: surrogate_linear.1
= control target key start
LH: loop header
LB: loop body
LE: loop exit
PB: predicated region body
PF: predicated region fallthrough
CT: control target
= control target key end

     0   :  { %9 = vsyncpa [#allocation4], 0  ;;  %s294_s0 = inlined_call_operand.hbm [shape: f32[8,32], index: 0, kind: input, shape index: {}]   ;;  %s295_s1 = inlined_call_operand.vmem [shape: f32[1,32], index: 1, kind: input, shape index: {}]   ;;  %s296_s2 = inlined_call_operand.<no memory space> [shape: f32[1,1], index: 2, kind: input, shape index: {}]   ;;  %s297_s3 = inlined_call_operand.hbm [shape: f32[1,1,8], index: 3, kind: output, shape index: {}]  }
   0x1   :  { %10 = vsyncpa [#allocation5], 0  ;;  %s16_s14 = sshll.u32 %s294_s0, 4  ;;  %s260_s15 = smov [#allocation3]   ;;  %s17_s14 = int_to_ptr.hbm [resolvable:$true] %s16_s14 }
   0x2   :  { %s18_s16 = sshll.u32 %s260_s15, 4  ;;  %s19_s16 = int_to_ptr.vmem [resolvable:$true] %s18_s16 }
   0x3   :  { %21 = dma.hbm_to_vmem [thread:$0]  %s17_s14, 128, %s19_s16, [#allocation4]  }
   0x4   :  { %256 = dma.done.wait [#allocation4], 128  }
   0x5   :  { %257 = vsyncadd [#allocation4], 4294967168  ;;  %vm34_vm0 = vcmask 261120   ;;  %v31_v0 = vld [vmem:[#allocation3] sm:$0xff]  ;;  %v33_v14 = vstv %s296_s2  ;;  %s261_s19 = smov [#allocation6]   ;;  %s196_s23 = sshll.u32 %s297_s3, 4  ;;  %s197_s23 = int_to_ptr.hbm [resolvable:$true] %s196_s23 }
   0x6   :  { %v30_v1 = vld [vmem:[%s295_s1] sm:$0x1]  ;;  %v39_v2 = vsel %vm34_vm0, %v31_v0, 0  ;;  %s194_s20 = sshll.u32 %s261_s19, 4  ;;  %vm187_vm1 = vcmask 57344   ;;  %s195_s20 = int_to_ptr.vmem [resolvable:$true] %s194_s20 }
   0x7   :  { %v36_v3 = vsel %vm34_vm0, %v30_v1, 0  ;;  %v56_v4 = vand.u32 4294901760, %v39_v2 }
   0x8   :  { %v58_v5 = vand.u32 4294901760, %v36_v3 }
   0x9   :  { %v83_v6 = vsub.f32 %v39_v2, %v56_v4  ;;  %57 = vmatpush.xpose.msra.mxu0 %v56_v4  ;;  %133 = vmatpush.xpose.msra.mxu3 %v56_v4 }
   0xa   :  { %v59_v7 = vsub.f32 %v36_v3, %v58_v5 }
   0xb   :  { %110 = vmatpush.xpose.msra.mxu2 %v83_v6  ;;  %v84_v8 = vand.u32 4294901760, %v83_v6 }
   0xc   :  { %v60_v9 = vand.u32 4294901760, %v59_v7 }
   0xd   :  { %v85_v10 = vsub.f32 %v83_v6, %v84_v8  ;;  %159 = vmatpush.xpose.msrb.mxu0 %v84_v8 }
   0xe   :  { %v61_v11 = vsub.f32 %v59_v7, %v60_v9  ;;  %137 = vmatmul.f32.vlgmr.msra.gmra.mxu3 %v60_v9  ;;  %113 = vmatmul.f32.vlgmr.msra.gmra.mxu2 %v59_v7 }
   0xf   :  { %v86_v12 = vand.u32 4294901760, %v85_v10 }
  0x10   :  { %v62_v13 = vand.u32 4294901760, %v61_v11 }
  0x11   :  { %87 = vmatpush.xpose.msra.mxu1 %v86_v12 }
  0x12   :  { %63 = vmatmul.f32.vlgmr.msra.gmra.mxu0 %v62_v13 }
  0x14   :  { %89 = vmatmul.f32.vlgmr.msra.gmra.mxu1 %v58_v5 }
  0x15   :  { %181 = vmatpush.xpose.msrb.mxu1 %v56_v4 }
  0x1a   :  { %161 = vmatmul.f32.vlgmr.msrb.gmra.mxu0 %v58_v5 }
  0x1c   :  { %183 = vmatmul.f32.vlgmr.msrb.gmra.mxu1 %v58_v5 }
  0x8f   :  { %v64_v15 = vpop.f32.mrf.mxu0 }
  0x90   :  { %v65_v16 = vadd.f32 %v64_v15, %v33_v14 }
  0x91   :  { %v90_v17 = vpop.f32.mrf.mxu1  ;;  %v114_v18 = vpop.f32.mrf.mxu2 }
  0x92   :  { %v91_v19 = vadd.f32 %v90_v17, %v65_v16  ;;  %v138_v20 = vpop.f32.mrf.mxu3 }
  0x94   :  { %v115_v21 = vadd.f32 %v114_v18, %v91_v19 }
  0x96   :  { %v139_v22 = vadd.f32 %v138_v20, %v115_v21 }
  0x97   :  { %v162_v23 = vpop.f32.mrf.mxu0 }
  0x98   :  { %v163_v24 = vadd.f32 %v162_v23, %v139_v22 }
  0x99   :  { %v184_v25 = vpop.f32.mrf.mxu1 }
  0x9a   :  { %v185_v26 = vadd.f32 %v184_v25, %v163_v24 }
  0x9c   :  { %188 = vst.msk [vmem:[#allocation6] sm:$0x1] %vm187_vm1, %v185_v26 }
  0x9d   :  { %199 = dma.vmem_to_hbm [thread:$0]  %s195_s20, 16, %s197_s23, [#allocation5]  }
  0x9e   :  { %258 = dma.done.wait [#allocation5], 16  }
  0x9f   :  { %259 = vsyncadd [#allocation5], 4294967280 }
  0xa0   :  { %204 = vsyncpa [#allocation4], 1 }
  0xa1   :  { %205 = vsyncpa [#allocation5], 1 }

</bundles_post_ra>
